<compile_context>
chip_gen: v5e
topology: v5e:2x2
jax: 0.10.0
libtpu: 0.0.40
codegen_flags: <defaults>
</compile_context>

<pallas_src>
import functools

import jax
import jax.numpy as jnp
from jax.experimental import pallas as pl
from jax.experimental.pallas import tpu as pltpu

THRESH = 1.0   # LIF.thresh
DECAY = 0.5    # LIF.decay
BN_EPS = 1e-5  # tdBatchNorm eps


# ------------------------------ Pallas kernel ------------------------------- #

def basic_block_kernel(x_ref, mask_ref, w1_ref, b1_ref, w2_ref, b2_ref,
                       o_ref, mem1_ref, mem2_ref, *, shifts, thresh, decay):
    """Whole BasicBlock for one (shard, timestep) grid point.

    x_ref   : (Cp, P) f32   input activations (channels on sublanes, pixels on lanes)
    mask_ref: (9, 1, P) f32 per-tap zero-padding masks (lane-dense)
    w*_ref  : (Cp, 9*Cp) bf16 conv taps with BN scale folded in; b*_ref: (Cp, 1) f32 bias
    o_ref   : (Cp, P) bf16  output spikes
    mem*_ref: (Cp, P) f32   LIF membranes, carried across the (innermost) time axis
    """
    t = pl.program_id(1)

    @pl.when(t == 0)
    def _():
        mem1_ref[...] = jnp.zeros_like(mem1_ref)
        mem2_ref[...] = jnp.zeros_like(mem2_ref)

    x = x_ref[...]                       # (Cp, P) f32
    masks = mask_ref[...]                # (9, 1, P) f32

    def conv_bn(inp, w_ref, b_ref):
        # 3x3 'same' conv + folded-BN bias as ONE (Cp,9Cp) @ (9Cp,P) bf16 matmul (f32 acc).
        taps = []
        for k, sh in enumerate(shifts):
            if sh == 0:
                taps.append(inp)                                   # centre tap: all valid
            else:
                taps.append(pltpu.roll(inp, sh, axis=1) * masks[k])
        patch = jnp.concatenate(taps, axis=0).astype(jnp.bfloat16)  # (9*Cp, P)
        y = jnp.dot(w_ref[...], patch, preferred_element_type=jnp.float32)
        return y + b_ref[...]

    # conv1_s = tdLayer(conv3x3, tdBatchNorm) ; spike1 = LIF
    mem1 = mem1_ref[...] * decay + conv_bn(x, w1_ref, b1_ref)
    spk1 = (mem1 >= thresh).astype(jnp.float32)
    mem1_ref[...] = mem1 * (1.0 - spk1)

    # conv2_s = tdLayer(conv3x3, tdBatchNorm) ; out += identity ; spike2 = LIF
    mem2 = mem2_ref[...] * decay + (conv_bn(spk1, w2_ref, b2_ref) + x)
    spk2 = (mem2 >= thresh).astype(jnp.float32)
    mem2_ref[...] = mem2 * (1.0 - spk2)

    o_ref[...] = spk2.astype(o_ref.dtype)


# --------------------------------- glue ------------------------------------- #

def _fold_conv_bn(w, bn, Cp, eps=BN_EPS, alpha=1.0):
    """Fold tdBatchNorm (running stats, alpha=1) into the conv weights (f32) and a bias.

    Returns w_flat (Cp, 9*Cp) bf16 with flat index (ky*3+kx)*Cp + cin, and bias (Cp, 1) f32.
    """
    gamma, beta, mean, var = bn
    scale = alpha * gamma / jnp.sqrt(var + eps)                  # (Cout,)
    bias = beta - mean * scale                                   # (Cout,)
    cout, cin = w.shape[0], w.shape[1]
    wf = w.astype(jnp.float32) * scale[:, None, None, None]      # fold scale in f32
    wf = jnp.transpose(wf, (0, 2, 3, 1))                         # (Cout, 3, 3, Cin)
    wf = jnp.pad(wf, ((0, Cp - cout), (0, 0), (0, 0), (0, Cp - cin)))
    wf = wf.reshape(Cp, 9 * Cp).astype(jnp.bfloat16)
    bias_p = jnp.pad(bias.astype(jnp.float32), (0, Cp - cout)).reshape(Cp, 1)
    return wf, bias_p


def _tap_masks(H, W, Nb):
    """mask[k, 0, nb*H*W + r] = 1 iff the tap-k neighbour of pixel r lies inside the image."""
    HW = H * W
    r = jnp.arange(HW)
    h, w = r // W, r % W
    rows = []
    for dy in (-1, 0, 1):
        for dx in (-1, 0, 1):
            valid = (h + dy >= 0) & (h + dy < H) & (w + dx >= 0) & (w + dx < W)
            rows.append(valid.astype(jnp.float32))
    m = jnp.stack(rows, axis=0)                                   # (9, HW)
    m = jnp.tile(m, (1, Nb))                                      # (9, Nb*HW)
    return m[:, None, :]                                          # (9, 1, P)


def basic_block_forward(x_nchwt, w1, bn1, w2, bn2):
    """BasicBlock.forward (stride=1, downsample=None, groups=1).

    x_nchwt: (N, Cin, H, W, T) float32; w1, w2: (planes, Cin, 3, 3) (bias=False);
    bn1/bn2: (gamma, beta, running_mean, running_var) each (planes,).
    Returns (N, planes, H, W, T) float32 of {0., 1.} spikes.
    """
    N, C, H, W, T = x_nchwt.shape
    HW = H * W
    assert w1.shape[1] == C and w1.shape[0] == w2.shape[0] == w2.shape[1] == C, \
        "stride=1 / no-downsample BasicBlock requires inplanes == planes"
    assert HW % 128 == 0, "flattened pixel axis must be lane-aligned (multiple of 128)"

    Cp = ((C + 7) // 8) * 8                      # sublane-aligned channel count
    n_shards = 2 if (N % 2 == 0 and N >= 2) else 1   # >=2-wide parallel axis for v7x
    Nb = N // n_shards
    P = Nb * HW                                  # lane axis per grid step

    # Input -> (T, n_shards, Cp, P), channels zero-padded, pixels flattened on lanes.
    x = jnp.transpose(x_nchwt, (4, 0, 1, 2, 3)).astype(jnp.float32)   # (T, N, C, H, W)
    x = jnp.pad(x, ((0, 0), (0, 0), (0, Cp - C), (0, 0), (0, 0)))
    x = x.reshape(T, n_shards, Nb, Cp, H, W)
    x = jnp.transpose(x, (0, 1, 3, 2, 4, 5)).reshape(T, n_shards, Cp, P)

    w1f, b1f = _fold_conv_bn(w1, bn1, Cp)
    w2f, b2f = _fold_conv_bn(w2, bn2, Cp)
    masks = _tap_masks(H, W, Nb)

    # Static roll amounts: rolled[p] = x[(p + dy*W + dx) % P]; masks neutralise any wrap.
    shifts = tuple((-(dy * W + dx)) % P for dy in (-1, 0, 1) for dx in (-1, 0, 1))

    rep3 = lambda s, t: (0, 0, 0)
    rep2 = lambda s, t: (0, 0)
    out = pl.pallas_call(
        functools.partial(basic_block_kernel, shifts=shifts, thresh=THRESH, decay=DECAY),
        out_shape=jax.ShapeDtypeStruct((T, n_shards, Cp, P), jnp.bfloat16),
        grid=(n_shards, T),
        in_specs=[
            pl.BlockSpec((None, None, Cp, P), lambda s, t: (t, s, 0, 0)),  # x (squeezed)
            pl.BlockSpec((9, 1, P), rep3),                                  # padding masks
            pl.BlockSpec((Cp, 9 * Cp), rep2),                               # conv1 taps (BN folded)
            pl.BlockSpec((Cp, 1), rep2),                                    # bn1 bias
            pl.BlockSpec((Cp, 9 * Cp), rep2),                               # conv2 taps (BN folded)
            pl.BlockSpec((Cp, 1), rep2),                                    # bn2 bias
        ],
        out_specs=pl.BlockSpec((None, None, Cp, P), lambda s, t: (t, s, 0, 0)),
        scratch_shapes=[pltpu.VMEM((Cp, P), jnp.float32),                   # LIF1 membrane
                        pltpu.VMEM((Cp, P), jnp.float32)],                  # LIF2 membrane
        compiler_params=pltpu.CompilerParams(
            dimension_semantics=("parallel", "arbitrary")),
    )(x, masks, w1f, b1f, w2f, b2f)

    out = out.reshape(T, n_shards, Cp, Nb, H, W)
    out = jnp.transpose(out, (1, 3, 2, 4, 5, 0)).reshape(N, Cp, H, W, T)
    return out[:, :C].astype(jnp.float32)


# ------------------------ pure-JAX reference (self-check) -------------------- #

def _reference_forward(x_nchwt, w1, bn1, w2, bn2):
    N, C, H, W, T = x_nchwt.shape

    def fold(w, bn):
        gamma, beta, mean, var = bn
        scale = gamma / jnp.sqrt(var + BN_EPS)
        bias = beta - mean * scale
        wf = (w.astype(jnp.float32) * scale[:, None, None, None]).astype(jnp.bfloat16)
        return wf, bias.astype(jnp.float32)

    w1f, b1 = fold(w1, bn1)
    w2f, b2 = fold(w2, bn2)

    def conv_bn(xt, wf, b):
        y = jax.lax.conv_general_dilated(
            xt.astype(jnp.bfloat16),
            jnp.transpose(wf, (2, 3, 1, 0)),
            window_strides=(1, 1), padding=((1, 1), (1, 1)),
            dimension_numbers=("NHWC", "HWIO", "NHWC"),
            preferred_element_type=jnp.float32)
        return y + b.reshape(1, 1, 1, -1)

    x_t = jnp.transpose(x_nchwt, (4, 0, 2, 3, 1)).astype(jnp.float32)  # (T, N, H, W, C)
    mem1 = jnp.zeros((N, H, W, C), jnp.float32)
    mem2 = jnp.zeros((N, H, W, C), jnp.float32)
    outs = []
    for t in range(T):
        mem1 = mem1 * DECAY + conv_bn(x_t[t], w1f, b1)
        s1 = (mem1 >= THRESH).astype(jnp.float32)
        mem1 = mem1 * (1.0 - s1)
        mem2 = mem2 * DECAY + conv_bn(s1, w2f, b2) + x_t[t]
        s2 = (mem2 >= THRESH).astype(jnp.float32)
        mem2 = mem2 * (1.0 - s2)
        outs.append(s2)
    out = jnp.stack(outs, axis=0)                                      # (T, N, H, W, C)
    return jnp.transpose(out, (1, 4, 2, 3, 0))


# ---------------------------------- main ------------------------------------- #

if __name__ == "__main__":
    key = jax.random.PRNGKey(0)
    ks = jax.random.split(key, 11)

    # stride=1 & no downsample => inplanes == planes.
    Nb_, Cin, H, W, T = 2, 4, 16, 16, 4
    planes = Cin

    x = jax.random.uniform(ks[0], (Nb_, Cin, H, W, T), jnp.float32)          # like torch.rand
    w1 = jax.random.normal(ks[1], (planes, Cin, 3, 3), jnp.float32) * 0.3
    w2 = jax.random.normal(ks[2], (planes, planes, 3, 3), jnp.float32) * 0.3
    bn1 = (jax.random.uniform(ks[3], (planes,), minval=0.5, maxval=1.5),     # gamma
           jax.random.normal(ks[4], (planes,)) * 0.1,                        # beta
           jax.random.normal(ks[5], (planes,)) * 0.1,                        # running_mean
           jax.random.uniform(ks[6], (planes,), minval=0.5, maxval=1.5))     # running_var
    bn2 = (jax.random.uniform(ks[7], (planes,), minval=0.5, maxval=1.5),
           jax.random.normal(ks[8], (planes,)) * 0.1,
           jax.random.normal(ks[9], (planes,)) * 0.1,
           jax.random.uniform(ks[10], (planes,), minval=0.5, maxval=1.5))

    out = jax.block_until_ready(basic_block_forward(x, w1, bn1, w2, bn2))

    assert out.shape == (Nb_, planes, H, W, T), out.shape
    # LIF output must be binary spikes.
    assert bool(jnp.all((out == 0.0) | (out == 1.0)))

    # Cross-check against a pure-JAX implementation of the module's forward pass
    # (tolerate a tiny spike-flip rate from bf16 / accumulation-order rounding).
    ref = jax.block_until_ready(_reference_forward(x, w1, bn1, w2, bn2))
    mismatch = float(jnp.mean(jnp.abs(out - ref)))
    assert mismatch < 0.02, f"spike mismatch rate {mismatch:.4f}"

    print("KERNEL_OK")
</pallas_src>

<mosaic_0001>
module attributes {stable_mosaic.version = 11 : i64} {
  func.func @basic_block_kernel(%arg0: i32, %arg1: i32, %arg2: memref<1x1x8x256xf32, #tpu.memory_space<vmem>>, %arg3: memref<9x1x256xf32, #tpu.memory_space<vmem>>, %arg4: memref<8x72xbf16, #tpu.memory_space<vmem>>, %arg5: memref<8x1xf32, #tpu.memory_space<vmem>>, %arg6: memref<8x72xbf16, #tpu.memory_space<vmem>>, %arg7: memref<8x1xf32, #tpu.memory_space<vmem>>, %arg8: memref<1x1x8x256xbf16, #tpu.memory_space<vmem>>, %arg9: memref<8x256xf32, #tpu.memory_space<vmem>>, %arg10: memref<8x256xf32, #tpu.memory_space<vmem>>) attributes {dimension_semantics = [#tpu.dimension_semantics<parallel>, #tpu.dimension_semantics<arbitrary>], iteration_bounds = array<i64: 2, 4>, scalar_prefetch = 0 : i64, scratch_operands = 2 : i64, tpu.core_type = #tpu.core_type<tc>, window_params = [{transform_indices = @transform_0, window_bounds = array<i64: 1, 1, 8, 256>}, {pipeline_mode = #tpu.pipeline_mode<synchronous>, transform_indices = @transform_1, window_bounds = array<i64: 9, 1, 256>}, {pipeline_mode = #tpu.pipeline_mode<synchronous>, transform_indices = @transform_2, window_bounds = array<i64: 8, 72>}, {pipeline_mode = #tpu.pipeline_mode<synchronous>, transform_indices = @transform_3, window_bounds = array<i64: 8, 1>}, {pipeline_mode = #tpu.pipeline_mode<synchronous>, transform_indices = @transform_4, window_bounds = array<i64: 8, 72>}, {pipeline_mode = #tpu.pipeline_mode<synchronous>, transform_indices = @transform_5, window_bounds = array<i64: 8, 1>}, {transform_indices = @transform_6, window_bounds = array<i64: 1, 1, 8, 256>}]} {
    %c0_i32 = arith.constant 0 : i32
    %0 = arith.cmpi eq, %arg1, %c0_i32 : i32
    %1 = arith.extui %0 : i1 to i32
    %c0_i32_0 = arith.constant 0 : i32
    %2 = arith.cmpi ne, %1, %c0_i32_0 : i32
    scf.if %2 {
      %cst_42 = arith.constant 0.000000e+00 : f32
      %129 = vector.broadcast %cst_42 : f32 to vector<8x256xf32>
      %c0_43 = arith.constant 0 : index
      %c0_44 = arith.constant 0 : index
      %130 = vector.load %arg9[%c0_43, %c0_44] : memref<8x256xf32, #tpu.memory_space<vmem>>, vector<8x256xf32>
      tpu.vector_store %arg9[%c0_43, %c0_44], %129 {strides = array<i32>} : memref<8x256xf32, #tpu.memory_space<vmem>>, vector<8x256xf32>,
      %cst_45 = arith.constant 0.000000e+00 : f32
      %131 = vector.broadcast %cst_45 : f32 to vector<8x256xf32>
      %c0_46 = arith.constant 0 : index
      %c0_47 = arith.constant 0 : index
      %132 = vector.load %arg10[%c0_46, %c0_47] : memref<8x256xf32, #tpu.memory_space<vmem>>, vector<8x256xf32>
      tpu.vector_store %arg10[%c0_46, %c0_47], %131 {strides = array<i32>} : memref<8x256xf32, #tpu.memory_space<vmem>>, vector<8x256xf32>,
    } else {
    }
    %c0 = arith.constant 0 : index
    %c0_1 = arith.constant 0 : index
    %c0_2 = arith.constant 0 : index
    %c0_3 = arith.constant 0 : index
    %3 = vector.load %arg2[%c0, %c0_1, %c0_2, %c0_3] : memref<1x1x8x256xf32, #tpu.memory_space<vmem>>, vector<1x1x8x256xf32>
    %4 = vector.shape_cast %3 : vector<1x1x8x256xf32> to vector<8x256xf32>
    %c0_4 = arith.constant 0 : index
    %c0_5 = arith.constant 0 : index
    %c0_6 = arith.constant 0 : index
    %5 = vector.load %arg3[%c0_4, %c0_5, %c0_6] : memref<9x1x256xf32, #tpu.memory_space<vmem>>, vector<9x1x256xf32>
    %c0_7 = arith.constant 0 : index
    %c0_8 = arith.constant 0 : index
    %6 = vector.load %arg9[%c0_7, %c0_8] : memref<8x256xf32, #tpu.memory_space<vmem>>, vector<8x256xf32>
    %cst = arith.constant 5.000000e-01 : f32
    %7 = vector.broadcast %cst : f32 to vector<8x256xf32>
    %8 = arith.mulf %6, %7 : vector<8x256xf32>
    %c17_i32 = arith.constant 17 : i32
    %9 = tpu.dynamic_rotate %4 by %c17_i32 dim 1 : vector<8x256xf32>, i32 -> vector<8x256xf32>
    %10 = vector.extract_strided_slice %5 {offsets = [0, 0, 0], sizes = [1, 1, 256], strides = [1, 1, 1]} : vector<9x1x256xf32> to vector<1x1x256xf32>
    %11 = vector.shape_cast %10 : vector<1x1x256xf32> to vector<1x256xf32>
    %12 = vector.broadcast %11 : vector<1x256xf32> to vector<8x256xf32>
    %13 = arith.mulf %9, %12 : vector<8x256xf32>
    %c16_i32 = arith.constant 16 : i32
    %14 = tpu.dynamic_rotate %4 by %c16_i32 dim 1 : vector<8x256xf32>, i32 -> vector<8x256xf32>
    %15 = vector.extract_strided_slice %5 {offsets = [1, 0, 0], sizes = [1, 1, 256], strides = [1, 1, 1]} : vector<9x1x256xf32> to vector<1x1x256xf32>
    %16 = vector.shape_cast %15 : vector<1x1x256xf32> to vector<1x256xf32>
    %17 = vector.broadcast %16 : vector<1x256xf32> to vector<8x256xf32>
    %18 = arith.mulf %14, %17 : vector<8x256xf32>
    %c15_i32 = arith.constant 15 : i32
    %19 = tpu.dynamic_rotate %4 by %c15_i32 dim 1 : vector<8x256xf32>, i32 -> vector<8x256xf32>
    %20 = vector.extract_strided_slice %5 {offsets = [2, 0, 0], sizes = [1, 1, 256], strides = [1, 1, 1]} : vector<9x1x256xf32> to vector<1x1x256xf32>
    %21 = vector.shape_cast %20 : vector<1x1x256xf32> to vector<1x256xf32>
    %22 = vector.broadcast %21 : vector<1x256xf32> to vector<8x256xf32>
    %23 = arith.mulf %19, %22 : vector<8x256xf32>
    %c1_i32 = arith.constant 1 : i32
    %24 = tpu.dynamic_rotate %4 by %c1_i32 dim 1 : vector<8x256xf32>, i32 -> vector<8x256xf32>
    %25 = vector.extract_strided_slice %5 {offsets = [3, 0, 0], sizes = [1, 1, 256], strides = [1, 1, 1]} : vector<9x1x256xf32> to vector<1x1x256xf32>
    %26 = vector.shape_cast %25 : vector<1x1x256xf32> to vector<1x256xf32>
    %27 = vector.broadcast %26 : vector<1x256xf32> to vector<8x256xf32>
    %28 = arith.mulf %24, %27 : vector<8x256xf32>
    %c255_i32 = arith.constant 255 : i32
    %29 = tpu.dynamic_rotate %4 by %c255_i32 dim 1 : vector<8x256xf32>, i32 -> vector<8x256xf32>
    %30 = vector.extract_strided_slice %5 {offsets = [5, 0, 0], sizes = [1, 1, 256], strides = [1, 1, 1]} : vector<9x1x256xf32> to vector<1x1x256xf32>
    %31 = vector.shape_cast %30 : vector<1x1x256xf32> to vector<1x256xf32>
    %32 = vector.broadcast %31 : vector<1x256xf32> to vector<8x256xf32>
    %33 = arith.mulf %29, %32 : vector<8x256xf32>
    %c241_i32 = arith.constant 241 : i32
    %34 = tpu.dynamic_rotate %4 by %c241_i32 dim 1 : vector<8x256xf32>, i32 -> vector<8x256xf32>
    %35 = vector.extract_strided_slice %5 {offsets = [6, 0, 0], sizes = [1, 1, 256], strides = [1, 1, 1]} : vector<9x1x256xf32> to vector<1x1x256xf32>
    %36 = vector.shape_cast %35 : vector<1x1x256xf32> to vector<1x256xf32>
    %37 = vector.broadcast %36 : vector<1x256xf32> to vector<8x256xf32>
    %38 = arith.mulf %34, %37 : vector<8x256xf32>
    %c240_i32 = arith.constant 240 : i32
    %39 = tpu.dynamic_rotate %4 by %c240_i32 dim 1 : vector<8x256xf32>, i32 -> vector<8x256xf32>
    %40 = vector.extract_strided_slice %5 {offsets = [7, 0, 0], sizes = [1, 1, 256], strides = [1, 1, 1]} : vector<9x1x256xf32> to vector<1x1x256xf32>
    %41 = vector.shape_cast %40 : vector<1x1x256xf32> to vector<1x256xf32>
    %42 = vector.broadcast %41 : vector<1x256xf32> to vector<8x256xf32>
    %43 = arith.mulf %39, %42 : vector<8x256xf32>
    %c239_i32 = arith.constant 239 : i32
    %44 = tpu.dynamic_rotate %4 by %c239_i32 dim 1 : vector<8x256xf32>, i32 -> vector<8x256xf32>
    %45 = vector.extract_strided_slice %5 {offsets = [8, 0, 0], sizes = [1, 1, 256], strides = [1, 1, 1]} : vector<9x1x256xf32> to vector<1x1x256xf32>
    %46 = vector.shape_cast %45 : vector<1x1x256xf32> to vector<1x256xf32>
    %47 = vector.broadcast %46 : vector<1x256xf32> to vector<8x256xf32>
    %48 = arith.mulf %44, %47 : vector<8x256xf32>
    %49 = tpu.concatenate %13, %18, %23, %28, %4, %33, %38, %43, %48 in 0 : vector<8x256xf32>, vector<8x256xf32>, vector<8x256xf32>, vector<8x256xf32>, vector<8x256xf32>, vector<8x256xf32>, vector<8x256xf32>, vector<8x256xf32>, vector<8x256xf32> -> vector<72x256xf32>
    %50 = arith.truncf %49 : vector<72x256xf32> to vector<72x256xbf16>
    %c0_9 = arith.constant 0 : index
    %c0_10 = arith.constant 0 : index
    %51 = vector.load %arg4[%c0_9, %c0_10] : memref<8x72xbf16, #tpu.memory_space<vmem>>, vector<8x72xbf16>
    %cst_11 = arith.constant dense<0.000000e+00> : vector<8x256xf32>
    %52 = tpu.matmul %51, %50, %cst_11 {dimension_numbers = #tpu.dot_dimension_numbers<[1], [0], [0], [1], [0, 0, 1, 1], [], []>} : vector<8x72xbf16>, vector<72x256xbf16>, vector<8x256xf32> -> vector<8x256xf32>
    %c0_12 = arith.constant 0 : index
    %c0_13 = arith.constant 0 : index
    %53 = vector.load %arg5[%c0_12, %c0_13] : memref<8x1xf32, #tpu.memory_space<vmem>>, vector<8x1xf32>
    %54 = vector.broadcast %53 : vector<8x1xf32> to vector<8x256xf32>
    %55 = arith.addf %52, %54 : vector<8x256xf32>
    %56 = arith.addf %8, %55 : vector<8x256xf32>
    %cst_14 = arith.constant 1.000000e+00 : f32
    %57 = vector.broadcast %cst_14 : f32 to vector<8x256xf32>
    %58 = arith.cmpf oge, %56, %57 : vector<8x256xf32>
    %59 = arith.extui %58 : vector<8x256xi1> to vector<8x256xi32>
    %60 = arith.sitofp %59 : vector<8x256xi32> to vector<8x256xf32>
    %cst_15 = arith.constant 1.000000e+00 : f32
    %61 = vector.broadcast %cst_15 : f32 to vector<8x256xf32>
    %62 = arith.subf %61, %60 : vector<8x256xf32>
    %63 = arith.mulf %56, %62 : vector<8x256xf32>
    %c0_16 = arith.constant 0 : index
    %c0_17 = arith.constant 0 : index
    %64 = vector.load %arg9[%c0_16, %c0_17] : memref<8x256xf32, #tpu.memory_space<vmem>>, vector<8x256xf32>
    tpu.vector_store %arg9[%c0_16, %c0_17], %63 {strides = array<i32>} : memref<8x256xf32, #tpu.memory_space<vmem>>, vector<8x256xf32>,
    %c0_18 = arith.constant 0 : index
    %c0_19 = arith.constant 0 : index
    %65 = vector.load %arg10[%c0_18, %c0_19] : memref<8x256xf32, #tpu.memory_space<vmem>>, vector<8x256xf32>
    %cst_20 = arith.constant 5.000000e-01 : f32
    %66 = vector.broadcast %cst_20 : f32 to vector<8x256xf32>
    %67 = arith.mulf %65, %66 : vector<8x256xf32>
    %c17_i32_21 = arith.constant 17 : i32
    %68 = tpu.dynamic_rotate %60 by %c17_i32_21 dim 1 : vector<8x256xf32>, i32 -> vector<8x256xf32>
    %69 = vector.extract_strided_slice %5 {offsets = [0, 0, 0], sizes = [1, 1, 256], strides = [1, 1, 1]} : vector<9x1x256xf32> to vector<1x1x256xf32>
    %70 = vector.shape_cast %69 : vector<1x1x256xf32> to vector<1x256xf32>
    %71 = vector.broadcast %70 : vector<1x256xf32> to vector<8x256xf32>
    %72 = arith.mulf %68, %71 : vector<8x256xf32>
    %c16_i32_22 = arith.constant 16 : i32
    %73 = tpu.dynamic_rotate %60 by %c16_i32_22 dim 1 : vector<8x256xf32>, i32 -> vector<8x256xf32>
    %74 = vector.extract_strided_slice %5 {offsets = [1, 0, 0], sizes = [1, 1, 256], strides = [1, 1, 1]} : vector<9x1x256xf32> to vector<1x1x256xf32>
    %75 = vector.shape_cast %74 : vector<1x1x256xf32> to vector<1x256xf32>
    %76 = vector.broadcast %75 : vector<1x256xf32> to vector<8x256xf32>
    %77 = arith.mulf %73, %76 : vector<8x256xf32>
    %c15_i32_23 = arith.constant 15 : i32
    %78 = tpu.dynamic_rotate %60 by %c15_i32_23 dim 1 : vector<8x256xf32>, i32 -> vector<8x256xf32>
    %79 = vector.extract_strided_slice %5 {offsets = [2, 0, 0], sizes = [1, 1, 256], strides = [1, 1, 1]} : vector<9x1x256xf32> to vector<1x1x256xf32>
    %80 = vector.shape_cast %79 : vector<1x1x256xf32> to vector<1x256xf32>
    %81 = vector.broadcast %80 : vector<1x256xf32> to vector<8x256xf32>
    %82 = arith.mulf %78, %81 : vector<8x256xf32>
    %c1_i32_24 = arith.constant 1 : i32
    %83 = tpu.dynamic_rotate %60 by %c1_i32_24 dim 1 : vector<8x256xf32>, i32 -> vector<8x256xf32>
    %84 = vector.extract_strided_slice %5 {offsets = [3, 0, 0], sizes = [1, 1, 256], strides = [1, 1, 1]} : vector<9x1x256xf32> to vector<1x1x256xf32>
    %85 = vector.shape_cast %84 : vector<1x1x256xf32> to vector<1x256xf32>
    %86 = vector.broadcast %85 : vector<1x256xf32> to vector<8x256xf32>
    %87 = arith.mulf %83, %86 : vector<8x256xf32>
    %c255_i32_25 = arith.constant 255 : i32
    %88 = tpu.dynamic_rotate %60 by %c255_i32_25 dim 1 : vector<8x256xf32>, i32 -> vector<8x256xf32>
    %89 = vector.extract_strided_slice %5 {offsets = [5, 0, 0], sizes = [1, 1, 256], strides = [1, 1, 1]} : vector<9x1x256xf32> to vector<1x1x256xf32>
    %90 = vector.shape_cast %89 : vector<1x1x256xf32> to vector<1x256xf32>
    %91 = vector.broadcast %90 : vector<1x256xf32> to vector<8x256xf32>
    %92 = arith.mulf %88, %91 : vector<8x256xf32>
    %c241_i32_26 = arith.constant 241 : i32
    %93 = tpu.dynamic_rotate %60 by %c241_i32_26 dim 1 : vector<8x256xf32>, i32 -> vector<8x256xf32>
    %94 = vector.extract_strided_slice %5 {offsets = [6, 0, 0], sizes = [1, 1, 256], strides = [1, 1, 1]} : vector<9x1x256xf32> to vector<1x1x256xf32>
    %95 = vector.shape_cast %94 : vector<1x1x256xf32> to vector<1x256xf32>
    %96 = vector.broadcast %95 : vector<1x256xf32> to vector<8x256xf32>
    %97 = arith.mulf %93, %96 : vector<8x256xf32>
    %c240_i32_27 = arith.constant 240 : i32
    %98 = tpu.dynamic_rotate %60 by %c240_i32_27 dim 1 : vector<8x256xf32>, i32 -> vector<8x256xf32>
    %99 = vector.extract_strided_slice %5 {offsets = [7, 0, 0], sizes = [1, 1, 256], strides = [1, 1, 1]} : vector<9x1x256xf32> to vector<1x1x256xf32>
    %100 = vector.shape_cast %99 : vector<1x1x256xf32> to vector<1x256xf32>
    %101 = vector.broadcast %100 : vector<1x256xf32> to vector<8x256xf32>
    %102 = arith.mulf %98, %101 : vector<8x256xf32>
    %c239_i32_28 = arith.constant 239 : i32
    %103 = tpu.dynamic_rotate %60 by %c239_i32_28 dim 1 : vector<8x256xf32>, i32 -> vector<8x256xf32>
    %104 = vector.extract_strided_slice %5 {offsets = [8, 0, 0], sizes = [1, 1, 256], strides = [1, 1, 1]} : vector<9x1x256xf32> to vector<1x1x256xf32>
    %105 = vector.shape_cast %104 : vector<1x1x256xf32> to vector<1x256xf32>
    %106 = vector.broadcast %105 : vector<1x256xf32> to vector<8x256xf32>
    %107 = arith.mulf %103, %106 : vector<8x256xf32>
    %108 = tpu.concatenate %72, %77, %82, %87, %60, %92, %97, %102, %107 in 0 : vector<8x256xf32>, vector<8x256xf32>, vector<8x256xf32>, vector<8x256xf32>, vector<8x256xf32>, vector<8x256xf32>, vector<8x256xf32>, vector<8x256xf32>, vector<8x256xf32> -> vector<72x256xf32>
    %109 = arith.truncf %108 : vector<72x256xf32> to vector<72x256xbf16>
    %c0_29 = arith.constant 0 : index
    %c0_30 = arith.constant 0 : index
    %110 = vector.load %arg6[%c0_29, %c0_30] : memref<8x72xbf16, #tpu.memory_space<vmem>>, vector<8x72xbf16>
    %cst_31 = arith.constant dense<0.000000e+00> : vector<8x256xf32>
    %111 = tpu.matmul %110, %109, %cst_31 {dimension_numbers = #tpu.dot_dimension_numbers<[1], [0], [0], [1], [0, 0, 1, 1], [], []>} : vector<8x72xbf16>, vector<72x256xbf16>, vector<8x256xf32> -> vector<8x256xf32>
    %c0_32 = arith.constant 0 : index
    %c0_33 = arith.constant 0 : index
    %112 = vector.load %arg7[%c0_32, %c0_33] : memref<8x1xf32, #tpu.memory_space<vmem>>, vector<8x1xf32>
    %113 = vector.broadcast %112 : vector<8x1xf32> to vector<8x256xf32>
    %114 = arith.addf %111, %113 : vector<8x256xf32>
    %115 = arith.addf %114, %4 : vector<8x256xf32>
    %116 = arith.addf %67, %115 : vector<8x256xf32>
    %cst_34 = arith.constant 1.000000e+00 : f32
    %117 = vector.broadcast %cst_34 : f32 to vector<8x256xf32>
    %118 = arith.cmpf oge, %116, %117 : vector<8x256xf32>
    %119 = arith.extui %118 : vector<8x256xi1> to vector<8x256xi32>
    %120 = arith.sitofp %119 : vector<8x256xi32> to vector<8x256xf32>
    %cst_35 = arith.constant 1.000000e+00 : f32
    %121 = vector.broadcast %cst_35 : f32 to vector<8x256xf32>
    %122 = arith.subf %121, %120 : vector<8x256xf32>
    %123 = arith.mulf %116, %122 : vector<8x256xf32>
    %c0_36 = arith.constant 0 : index
    %c0_37 = arith.constant 0 : index
    %124 = vector.load %arg10[%c0_36, %c0_37] : memref<8x256xf32, #tpu.memory_space<vmem>>, vector<8x256xf32>
    tpu.vector_store %arg10[%c0_36, %c0_37], %123 {strides = array<i32>} : memref<8x256xf32, #tpu.memory_space<vmem>>, vector<8x256xf32>,
    %125 = arith.truncf %120 : vector<8x256xf32> to vector<8x256xbf16>
    %c0_38 = arith.constant 0 : index
    %c0_39 = arith.constant 0 : index
    %c0_40 = arith.constant 0 : index
    %c0_41 = arith.constant 0 : index
    %126 = vector.load %arg8[%c0_38, %c0_39, %c0_40, %c0_41] : memref<1x1x8x256xbf16, #tpu.memory_space<vmem>>, vector<1x1x8x256xbf16>
    %127 = vector.shape_cast %126 : vector<1x1x8x256xbf16> to vector<8x256xbf16>
    %128 = vector.shape_cast %125 : vector<8x256xbf16> to vector<1x1x8x256xbf16>
    tpu.vector_store %arg8[%c0_38, %c0_39, %c0_40, %c0_41], %128 {strides = array<i32>} : memref<1x1x8x256xbf16, #tpu.memory_space<vmem>>, vector<1x1x8x256xbf16>,
    return
  }
  func.func @transform_0(%arg0: i32, %arg1: i32) -> (i32, i32, i32, i32) {
    %c0_i32 = arith.constant 0 : i32
    %c0_i32_0 = arith.constant 0 : i32
    %c0_i32_1 = arith.constant 0 : i32
    return %arg1, %arg0, %c0_i32, %c0_i32_0 : i32, i32, i32, i32
  }
  func.func @transform_1(%arg0: i32, %arg1: i32) -> (i32, i32, i32) {
    %c0_i32 = arith.constant 0 : i32
    %c0_i32_0 = arith.constant 0 : i32
    %c0_i32_1 = arith.constant 0 : i32
    %c0_i32_2 = arith.constant 0 : i32
    return %c0_i32, %c0_i32_0, %c0_i32_1 : i32, i32, i32
  }
  func.func @transform_2(%arg0: i32, %arg1: i32) -> (i32, i32) {
    %c0_i32 = arith.constant 0 : i32
    %c0_i32_0 = arith.constant 0 : i32
    %c0_i32_1 = arith.constant 0 : i32
    return %c0_i32, %c0_i32_0 : i32, i32
  }
  func.func @transform_3(%arg0: i32, %arg1: i32) -> (i32, i32) {
    %c0_i32 = arith.constant 0 : i32
    %c0_i32_0 = arith.constant 0 : i32
    %c0_i32_1 = arith.constant 0 : i32
    return %c0_i32, %c0_i32_0 : i32, i32
  }
  func.func @transform_4(%arg0: i32, %arg1: i32) -> (i32, i32) {
    %c0_i32 = arith.constant 0 : i32
    %c0_i32_0 = arith.constant 0 : i32
    %c0_i32_1 = arith.constant 0 : i32
    return %c0_i32, %c0_i32_0 : i32, i32
  }
  func.func @transform_5(%arg0: i32, %arg1: i32) -> (i32, i32) {
    %c0_i32 = arith.constant 0 : i32
    %c0_i32_0 = arith.constant 0 : i32
    %c0_i32_1 = arith.constant 0 : i32
    return %c0_i32, %c0_i32_0 : i32, i32
  }
  func.func @transform_6(%arg0: i32, %arg1: i32) -> (i32, i32, i32, i32) {
    %c0_i32 = arith.constant 0 : i32
    %c0_i32_0 = arith.constant 0 : i32
    %c0_i32_1 = arith.constant 0 : i32
    return %arg1, %arg0, %c0_i32, %c0_i32_0 : i32, i32, i32, i32
  }
}

</mosaic_0001>

<bundles_post_ra>
// kernel: tpu_custom_call.1
= control target key start
LH: loop header
LB: loop body
LE: loop exit
PB: predicated region body
PF: predicated region fallthrough
CT: control target
= control target key end

     0   :  { %s1588_s0 = inlined_call_operand.hbm [shape: f32[4,2,8,256], index: 0, kind: input, shape index: {}]   ;;  %s1589_s1 = inlined_call_operand.hbm [shape: f32[9,1,256], index: 1, kind: input, shape index: {}]   ;;  %s1590_s2 = inlined_call_operand.vmem [shape: bf16[8,72], index: 2, kind: input, shape index: {}]   ;;  %s1591_s3 = inlined_call_operand.vmem [shape: f32[8,1], index: 3, kind: input, shape index: {}]   ;;  %s1592_s4 = inlined_call_operand.vmem [shape: bf16[8,72], index: 4, kind: input, shape index: {}]   ;;  %s1593_s5 = inlined_call_operand.vmem [shape: f32[8,1], index: 5, kind: input, shape index: {}]   ;;  %s1594_s6 = inlined_call_operand.hbm [shape: bf16[4,2,8,256], index: 6, kind: output, shape index: {}]  }
   0x1   :  { %1602 = sst [smem:[#allocation18_spill]] %s1589_s1 }
   0x2   :  { %1603 = sst [smem:[#allocation19_spill]] %s1594_s6 }
   0x3   :  { %11 = vsyncpa [#allocation5], 0 }
   0x4   :  { %13 = vsyncpa [#allocation5 + $0x1], 0 }
   0x5   :  { %14 = vsyncpa [#allocation8], 0 }
   0x6   :  { %15 = vsyncpa [#allocation6], 0 }
   0x7   :  { %17 = vsyncpa [#allocation6 + $0x1], 0  ;;  %s1159_s21 = smov 0   ;;  %s1161_s22 = smov 0  }
   0x8   :  { %s1163_s23 = smov 0   ;;  %s1165_s24 = smov 0  }
   0x9   :  { %s1167_s25 = smov 0   ;;  %s1169_s26 = smov 0  }
   0xa   :  { %s1171_s27 = smov 0   ;;  %s1173_s28 = smov 0  }
   0xb LB: > { %1604 = sst [smem:[#allocation13_spill]] %s1078_s21  ;;  %s764_s29 = sadd.s32 4294967295, %s1106_s28   ;;  %s1106_s28 = sphi %s1173_s28, %s23_s28   ;;  %s1102_s27 = sphi %s1171_s27, %s1628_s27   ;;  %s1098_s26 = sphi %s1169_s26, %s1627_s26   ;;  %s1094_s25 = sphi %s1167_s25, %s1626_s25   ;;  %s1090_s24 = sphi %s1165_s24, %s1625_s24   ;;  %s1086_s23 = sphi %s1163_s23, %s1624_s23   ;;  %s1082_s22 = sphi %s1161_s22, %s1623_s22   ;;  %s1078_s21 = sphi %s1159_s21, %s1622_s21  }
   0xc   : > { %p766_p0 = scmp.ge.s32.totalorder %s1106_s28, 1  ;;  %p1201_p1 = scmp.eq.s32.totalorder %s764_s29, 0 }
   0xd   : > { %p201_p2 = scmp.lt.s32.totalorder %s1106_s28, 9  ;;  %s1606_s1 = sld [smem:[#allocation18_spill]] }
   0xe   : > { %s1108_s11 = smov [#allocation7]   ;;  %s1109_s13 = smov 32  }
   0xf   : > { %p1209_p3 = pnand %p766_p0, %p201_p2  ;;  %s214_s12 = sshll.u32 %s1108_s11, 4  ;;  %s215_s12 = int_to_ptr.vmem [resolvable:$true] %s214_s12 }
  0x10   : > { %s1110_s14 = smov 2   ;;  %s765_s15 = sadd.s32 4294967294, %s1106_s28  }
  0x11   : > { %p806_p4 = pneg %p1209_p3  ;;  %s32_s16 = sadd.s32 1, %s1098_s26 }
  0x12   : > { %p33_p6 = scmp.ge.s32.totalorder %s32_s16, 4  ;;  %s35_s17 = sadd.s32 1, %s1102_s27 }
  0x13   : > { %s212_s9 = sshll.u32 %s1606_s1, 4  ;;  %p807_p5 = pnand %p806_p4, %p1201_p1  ;;  %s213_s9 = int_to_ptr.hbm [resolvable:$true] %s212_s9 }
  0x14   : > { %s44_s18 = sadd.s32 1, %s1086_s23  ;;  %p51_p7 = scmp.ne.s32.totalorder %s1086_s23, %s1082_s22 }
  0x15   : > { %809 = dma.hbm_to_vmem [thread:$0]  (!%p807_p5), %s213_s9, 288, %s215_s12, [#allocation8], %s1109_s13, %s1109_s13, %s1110_s14  }
  0x16   : > { %s1630_s16 = smov (%p33_p6, %s32_s16), 0  ;;  %s1632_s17 = smov (!%p33_p6, %s35_s17), %s1102_s27 }
  0x17   : > { %1608 = sst [smem:[#allocation14_spill]] %s1630_s16  ;;  %s39_s19 = ssub.s32 %s1098_s26, %s1630_s16 }
  0x18   : > { %p52_p8 = scmp.eq.s32.totalorder %s1106_s28, 0  ;;  %p37_p9 = scmp.ge.s32.totalorder %s1632_s17, 2 }
  0x19   : > { %p57_p10 = scmp.ne.s32.totalorder %s1082_s22, %s1078_s21  ;;  %p188_p11 = scmp.eq.s32.totalorder %s764_s29, 7 }
  0x1a   : > { %p194_p12 = scmp.eq.s32.totalorder %s765_s15, 7  ;;  %s1634_s17 = smov (%p37_p9, %s1632_s17), 0 }
  0x1b   : > { %1609 = sst [smem:[#allocation15_spill]] %s1634_s17  ;;  %p1235_p13 = por %p1201_p1, %p57_p10 }
  0x1c   : > { %p1242_p0 = por %p188_p11, %p51_p7  ;;  %s40_s8 = ssub.s32 %s1102_s27, %s1634_s17 }
  0x1d   : > { %p1248_p2 = por %p194_p12, %p57_p10  ;;  %s41_s29 = sor.u32 %s40_s8, %s39_s19 }
  0x1e   : > { %s1611_s7 = scalar_select %p1242_p0, 1, 0 }
  0x1f   : > { %s1613_s9 = scalar_select %p1248_p2, 1, 0 }
  0x20   : > { %1612 = sst [smem:[#allocation16_spill]] %s1611_s7  ;;  %p53_p4 = por %p52_p8, %p51_p7 }
  0x21   : > { %1614 = sst [smem:[#allocation17_spill]] %s1613_s9  ;;  %p42_p5 = scmp.eq.s32.totalorder %s41_s29, 0 }
  0x22   : > { %s240_s11 = sand.u32 1, %s1086_s23   ;;  %p819_p6 = scmp.lt.s32.totalorder %s1106_s28, 8 }
  0x23   : > { %s769_s12 = sshll.u32 %s240_s11, 4  ;;  %s770_s14 = sshll.u32 %s1102_s27, 1 }
  0x24   : > { %s1258_s13 = scalar_select %p42_p5, %s1086_s23, %s44_s18  }
  0x25   : > { %s771_s15 = sshll.u32 %s1098_s26, 2  ;;  %s244_s1 = scalar_lea.vmem [#allocation4], %s769_s12 }
  0x26   : > { %s255_s16 = sshll.u32 %s244_s1, 4  ;;  %s249_s21 = sadd.s32 %s771_s15, %s770_s14  ;;  %s256_s16 = int_to_ptr.vmem [resolvable:$true] %s255_s16 }
  0x27   : > { %s772_s7 = sshll.u32 %s249_s21, 3  ;;  %p811_p9 = pnand %p819_p6, %p53_p4 }
  0x28   : > { %s251_s9 = scalar_lea.hbm %s1588_s0, %s772_s7  ;;  %s241_s8 = scalar_lea.sflag [#allocation5], %s240_s11 }
  0x29   : > { %s253_s19 = sshll.u32 %s251_s9, 4  ;;  %264 = sbr.rel (%p1209_p3) target bundleno = 646 (0x286), region = 44  ;;  %s254_s19 = int_to_ptr.hbm [resolvable:$true] %s253_s19 }
  0x2a   : > { %813 = dma.hbm_to_vmem [thread:$0]  (!%p811_p9), %s254_s19, 256, %s256_s16, %s241_s8  }
  0x2b   : > { %s1268_s18 = sand.u32 (!%p1209_p3), 1, %s1082_s22  }
  0x2c   : > { %s774_s1 = sshll.u32 (!%p1209_p3), %s1268_s18, 4  ;;  %s267_s21 = scalar_lea.sflag (!%p1209_p3), [#allocation5], %s1268_s18 }
  0x2d   : > { %s270_s29 = scalar_lea.vmem (!%p1209_p3), [#allocation4], %s774_s1 }
  0x2e   : > { %1065 = dma.done.wait (%p1235_p13), %s267_s21, 256  }
  0x2f   : > { %1067 = vsyncadd (%p1235_p13), %s267_s21, 4294967040 }
  0x30   : > { %1069 = dma.done.wait (%p1201_p1), [#allocation8], 288  }
  0x31   : > { %1071 = vsyncadd (%p1201_p1), [#allocation8], 4294967008  ;;  %s776_s6 = sshll.u32 %s1268_s18, 3  ;;  %p777_p3 = scmp.ne.s32.totalorder %s1090_s24, 0 }
  0x32   : > { %s1281_s10 = scalar_lea.vmem [#allocation9], %s776_s6 }
  0x33   : > { %309 = sbr.rel (%p777_p3) target bundleno = 61 (0x3d), region = 56 }
  0x38   : > { %v1111_v0 = vmov 0.0  }
  0x39   : > { %310 = vst [vmem:[#allocation2] sm:$0xff] %v1111_v0 }
  0x3a   : > { %311 = vst [vmem:[#allocation2 + $0x8] sm:$0xff] %v1111_v0 }
  0x3b   : > { %312 = vst [vmem:[#allocation3 + $0x8] sm:$0xff] %v1111_v0 }
  0x3c   : > { %313 = vst [vmem:[#allocation3] sm:$0xff] %v1111_v0 }
  0x3d PF: > { %v1284_v1 = vld [vmem:[%s270_s29] sm:$0xff]  ;;  %s1112_s16 = smov 113   ;;  %s1113_s30 = smov 111   ;;  %v1292_v2 = vld [vmem:[%s270_s29 + $0x8] sm:$0xff]  ;;  %v332_v4 = vlaneseq  ;;  %vm463_vm3 = vcmask 1043456   ;;  %v1120_v50 = vmov 0  }
  0x3e   : > { %400 = vrot.lane.b32.xlu1 %v1284_v1, %s1112_s16  ;;  %428 = vrot.lane.b32.xlu0 %v1284_v1, %s1113_s30  ;;  %s1114_s17 = smov 112   ;;  %s1115_s20 = smov 127   ;;  %v1322_v9 = vld [vmem:[#allocation7 + $0x10] sm:$0x3]  ;;  %v1324_v10 = vld [vmem:[#allocation7 + $0xe] sm:$0x3] }
  0x3f   : > { %414 = vrot.lane.b32.xlu2 %v1284_v1, %s1114_s17  ;;  %s1116_s7 = smov 15   ;;  %s1117_s9 = smov 1   ;;  %v1320_v7 = vand.u32 127, %v332_v4  ;;  %v1327_v11 = vld [vmem:[#allocation7 + $0xc] sm:$0x3]  ;;  %v436_v12 = vperm.slane %v1322_v9, 0  ;;  %902 = vset.pattern.permute.xlu1 %v1120_v50 }
  0x40   : > { %s1118_s11 = smov 17   ;;  %s1119_s12 = smov 16   ;;  %v437_v13 = vperm.slane %v1322_v9, 1  ;;  %v422_v14 = vperm.slane %v1324_v10, 0  ;;  %v423_v15 = vperm.slane %v1324_v10, 1  ;;  %v408_v16 = vperm.slane %v1327_v11, 0  ;;  %943 = vset.pattern.permute.xlu0 %v1120_v50 }
  0x41   : > { %vm418_vm0 = vcmp.lt.s32.totalorder %v1320_v7, 112  ;;  %vm404_vm1 = vcmp.lt.s32.totalorder %v1320_v7, 113  ;;  %vm432_vm2 = vcmp.lt.s32.totalorder %v1320_v7, 111  ;;  %v409_v17 = vperm.slane %v1327_v11, 1  ;;  %v1353_v28 = vld [vmem:[#allocation7 + $0xa] sm:$0x3] }
  0x42   : > { %vm390_vm4 = vcmp.lt.s32.totalorder %v1320_v7, 127  ;;  %v394_v38 = vperm.slane %v1353_v28, 0  ;;  %v395_v39 = vperm.slane %v1353_v28, 1  ;;  %v453_v46 = vld [vmem:[%s1591_s3] sm:$0xff]  ;;  %vm376_vm5 = vcmp.lt.s32.totalorder %v1320_v7, 1  ;;  %s649_s19 = scalar_lea.sflag [#allocation6], %s1268_s18 }
  0x43   : > { %v1379_v49 = vld [vmem:[#allocation7 + $0x6] sm:$0x3]  ;;  %v1381_v51 = vld [vmem:[#allocation7 + $0x4] sm:$0x3]  ;;  %vm362_vm6 = vcmp.lt.s32.totalorder %v1320_v7, 15  ;;  %vm334_vm7 = vcmp.lt.s32.totalorder %v1320_v7, 17 }
  0x44   : > { %v380_v54 = vperm.slane %v1379_v49, 0  ;;  %v381_v56 = vperm.slane %v1379_v49, 1  ;;  %v366_v57 = vperm.slane %v1381_v51, 0  ;;  %v367_v58 = vperm.slane %v1381_v51, 1 }
  0x45   : > { %vm348_vm8 = vcmp.lt.s32.totalorder %v1320_v7, 16  ;;  %vm459_vm9 = vcmask 588800   ;;  %vm1122_vm12 = vmmov 1   ;;  %v1123_v10 = vmov 1.0   ;;  %v588_v7 = vld [vmem:[%s1592_s4] sm:$0xf] }
  0x46   : > { %402 = vrot.lane.b32.xlu1 %v1292_v2, %s1112_s16  ;;  %430 = vrot.lane.b32.xlu0 %v1292_v2, %s1113_s30 }
  0x47   : > { %416 = vrot.lane.b32.xlu2 %v1292_v2, %s1114_s17 }
  0x4e   : > { %388 = vrot.lane.b32.xlu1 %v1292_v2, %s1115_s20  ;;  %386 = vrot.lane.b32.xlu0 %v1284_v1, %s1115_s20 }
  0x4f   : > { %358 = vrot.lane.b32.xlu2 %v1284_v1, %s1116_s7 }
  0x56   : > { %372 = vrot.lane.b32.xlu1 %v1284_v1, %s1117_s9  ;;  %360 = vrot.lane.b32.xlu0 %v1292_v2, %s1116_s7 }
  0x57   : > { %374 = vrot.lane.b32.xlu2 %v1292_v2, %s1117_s9 }
  0x5e   : > { %330 = vrot.lane.b32.xlu1 %v1292_v2, %s1118_s11  ;;  %328 = vrot.lane.b32.xlu0 %v1284_v1, %s1118_s11 }
  0x5f   : > { %344 = vrot.lane.b32.xlu2 %v1284_v1, %s1119_s12 }
  0x66   : > { %346 = vrot.lane.b32.xlu0 %v1292_v2, %s1119_s12  ;;  %456 = vperm.xlu1 %902, %v453_v46  }
  0x99   : > { %v415_v3 = vpop.permute.xlu2 %414 }
  0xa1   : > { %v417_v8 = vpop.permute.xlu2 %416 }
  0xa2   : > { %v419_v20 = vsel %vm418_vm0, %v415_v3, %v417_v8  ;;  %v420_v24 = vsel %vm418_vm0, %v417_v8, %v415_v3 }
  0xa3   : > { %v426_v29 = vmul.f32 %v422_v14, %v419_v20  ;;  %v427_v34 = vmul.f32 %v423_v15, %v420_v24  ;;  %v1407_v20 = vld [vmem:[#allocation7] sm:$0x3] }
  0xa4   : > { %v339_v24 = vperm.slane %v1407_v20, 1 }
  0xa9   : > { %v359_v33 = vpop.permute.xlu2 %358 }
  0xb0   : > { %v401_v5 = vpop.permute.xlu1 %400  ;;  %v429_v6 = vpop.permute.xlu0 %428 }
  0xb1   : > { %v375_v55 = vpop.permute.xlu2 %374 }
  0xb8   : > { %v403_v18 = vpop.permute.xlu1 %402  ;;  %v431_v19 = vpop.permute.xlu0 %430 }
  0xb9   : > { %v405_v21 = vsel %vm404_vm1, %v401_v5, %v403_v18  ;;  %v433_v22 = vsel %vm432_vm2, %v429_v6, %v431_v19  ;;  %v434_v23 = vsel %vm432_vm2, %v431_v19, %v429_v6  ;;  %v406_v25 = vsel %vm404_vm1, %v403_v18, %v401_v5 }
  0xba   : > { %v440_v26 = vmul.f32 %v436_v12, %v433_v22  ;;  %v441_v27 = vmul.f32 %v437_v13, %v434_v23  ;;  %v412_v30 = vmul.f32 %v408_v16, %v405_v21  ;;  %v413_v35 = vmul.f32 %v409_v17, %v406_v25  ;;  %v1409_v21 = vld [vmem:[#allocation7 + $0x2] sm:$0x3]  ;;  %v345_v25 = vpop.permute.xlu2 %344 }
  0xbb   : > { %v338_v23 = vperm.slane %v1407_v20, 0  ;;  %v510_v20 = vld [vmem:[#allocation3 + $0x8] sm:$0xff] }
  0xbc   : > { %v450_v31 = vpack.c.bf16 %v440_v26, %v440_v26  ;;  %v451_v32 = vpack.c.bf16 %v441_v27, %v441_v27  ;;  %v448_v42 = vpack.c.bf16 %v426_v29, %v412_v30  ;;  %v449_v45 = vpack.c.bf16 %v427_v34, %v413_v35 }
  0xbd   : > { %v352_v26 = vperm.slane %v1409_v21, 0  ;;  %v353_v27 = vperm.slane %v1409_v21, 1 }
  0xbe   : > { %v465_v36 = vsel %vm463_vm3, %v450_v31, 0  ;;  %v468_v37 = vsel %vm463_vm3, %v451_v32, 0 }
  0xbf   : > { %473 = vmatpush.bf16.msra.mxu0 %v465_v36  ;;  %486 = vmatpush.bf16.msra.mxu1 %v468_v37 }
  0xc0   : > { %v389_v40 = vpop.permute.xlu1 %388  ;;  %v387_v41 = vpop.permute.xlu0 %386 }
  0xc1   : > { %v391_v43 = vsel %vm390_vm4, %v387_v41, %v389_v40  ;;  %v392_v44 = vsel %vm390_vm4, %v389_v40, %v387_v41 }
  0xc2   : > { %v398_v47 = vmul.f32 %v394_v38, %v391_v43  ;;  %v399_v48 = vmul.f32 %v395_v39, %v392_v44  ;;  %v324_v43 = vld [vmem:[#allocation2] sm:$0xff]  ;;  %v325_v44 = vld [vmem:[#allocation2 + $0x8] sm:$0xff] }
  0xc3   : > { %474 = vmatpush.bf16.msra.mxu0 %v448_v42  ;;  %487 = vmatpush.bf16.msra.mxu1 %v449_v45  ;;  %v452_v42 = vld [vmem:[%s1590_s2] sm:$0xf]  ;;  %v326_v46 = vmul.f32 0.5, %v324_v43 }
  0xc4   : > { %v446_v52 = vpack.c.bf16 %v398_v47, %v1284_v1  ;;  %v447_v53 = vpack.c.bf16 %v399_v48, %v1292_v2  ;;  %v327_v47 = vmul.f32 0.5, %v325_v44 }
  0xc7   : > { %475 = vmatpush.bf16.msra.mxu0 %v446_v52  ;;  %488 = vmatpush.bf16.msra.mxu1 %v447_v53 }
  0xc8   : > { %v373_v59 = vpop.permute.xlu1 %372  ;;  %v361_v60 = vpop.permute.xlu0 %360 }
  0xc9   : > { %v377_v61 = vsel %vm376_vm5, %v373_v59, %v375_v55  ;;  %v378_v62 = vsel %vm376_vm5, %v375_v55, %v373_v59  ;;  %v363_v63 = vsel %vm362_vm6, %v359_v33, %v361_v60  ;;  %v364_v0 = vsel %vm362_vm6, %v361_v60, %v359_v33 }
  0xca   : > { %v384_v3 = vmul.f32 %v380_v54, %v378_v62  ;;  %v385_v4 = vmul.f32 %v381_v56, %v377_v61  ;;  %v370_v5 = vmul.f32 %v366_v57, %v364_v0  ;;  %v371_v6 = vmul.f32 %v367_v58, %v363_v63 }
  0xcb   : > { %v1121_v60 = vmov 0.0  }
  0xcc   : > { %v444_v8 = vpack.c.bf16 %v384_v3, %v370_v5  ;;  %v445_v18 = vpack.c.bf16 %v385_v4, %v371_v6 }
  0xce   : > { %476 = vmatpush.bf16.msra.mxu0 %v444_v8  ;;  %489 = vmatpush.bf16.msra.mxu1 %v445_v18  ;;  %v589_v18 = vld [vmem:[%s1593_s5] sm:$0xff] }
  0xd0   : > { %v329_v19 = vpop.permute.xlu0 %328  ;;  %v331_v22 = vpop.permute.xlu1 %330 }
  0xd1   : > { %v335_v29 = vsel %vm334_vm7, %v329_v19, %v331_v22  ;;  %v336_v30 = vsel %vm334_vm7, %v331_v22, %v329_v19 }
  0xd2   : > { %v342_v34 = vmul.f32 %v338_v23, %v336_v30  ;;  %v343_v35 = vmul.f32 %v339_v24, %v335_v29 }
  0xd8   : > { %v347_v31 = vpop.permute.xlu0 %346  ;;  %v457_v45 = vpop.permute.xlu1 %456 }
  0xd9   : > { %v349_v32 = vsel %vm348_vm8, %v345_v25, %v347_v31  ;;  %v350_v33 = vsel %vm348_vm8, %v347_v31, %v345_v25 }
  0xda   : > { %v356_v36 = vmul.f32 %v352_v26, %v350_v33  ;;  %v357_v37 = vmul.f32 %v353_v27, %v349_v32 }
  0xdc   : > { %v442_v40 = vpack.c.bf16 %v356_v36, %v342_v34  ;;  %v443_v41 = vpack.c.bf16 %v357_v37, %v343_v35 }
  0xde   : > { %477 = vmatpush.bf16.msra.mxu0 %v442_v40  ;;  %490 = vmatpush.bf16.msra.mxu1 %v443_v41 }
  0xe1   : > { %778 = vmatmul.msk.bf16.vlgmr.msra.gmra.mxu0 %vm459_vm9, %v452_v42  ;;  %779 = vmatmul.msk.bf16.vlgmr.msra.gmra.mxu1 %vm459_vm9, %v452_v42 }
 0x15e   : > { %v479_v48 = vpop.f32.mrf.mxu0  ;;  %v492_v50 = vpop.f32.mrf.mxu1 }
 0x15f   : > { %v480_v52 = vadd.f32 %v479_v48, %v457_v45  ;;  %v493_v53 = vadd.f32 %v492_v50, %v457_v45 }
 0x161   : > { %v1438_v55 = vadd.f32 %v480_v52, %v326_v46  ;;  %v1440_v59 = vadd.f32 %v493_v53, %v327_v47 }
 0x163   : > { %vm498_vm10 = vcmp.ge.f32.partialorder %v1438_v55, 1.0  ;;  %vm499_vm11 = vcmp.ge.f32.partialorder %v1440_v59, 1.0 }
 0x164   : > { %v780_v61 = vsel %vm498_vm10, 1.0, %v1121_v60  ;;  %v781_v62 = vsel %vm499_vm11, 1.0, %v1121_v60  ;;  %vm782_vm13 = vmpackc.low %vm1122_vm12, %vm498_vm10 }
 0x165   : > { %v504_v63 = vsub.f32 1.0, %v780_v61  ;;  %v505_v0 = vsub.f32 1.0, %v781_v62  ;;  %v913_v3 = vpack.i.bf16 %v781_v62, %v780_v61  ;;  %vm786_vm14 = vmpackc.low %vm1122_vm12, %vm499_vm11 }
 0x166   : > { %v481_v4 = vpop.f32.mrf.mxu0  ;;  %v494_v5 = vpop.f32.mrf.mxu1 }
 0x167   : > { %v506_v6 = vmul.f32 %v504_v63, %v1438_v55  ;;  %v507_v8 = vmul.f32 %v505_v0, %v1440_v59  ;;  %914 = vrot.lane.b32.xlu1 %v913_v3, %s1114_s17  ;;  %909 = vrot.lane.b32.xlu0 %v913_v3, %s1112_s16  ;;  %s793_s16 = sshll.u32 %s1094_s25, 1  ;;  %s1615_s25 = sld [smem:[#allocation19_spill]] }
 0x168   : > { %904 = vrot.lane.b32.xlu2 %v913_v3, %s1113_s30  ;;  %s794_s30 = sshll.u32 %s1090_s24, 2 }
 0x169   : > { %508 = vst [vmem:[#allocation2] sm:$0xff] %v506_v6  ;;  %s660_s17 = sadd.s32 %s794_s30, %s793_s16 }
 0x16a   : > { %509 = vst [vmem:[#allocation2 + $0x8] sm:$0xff] %v507_v8 }
 0x16f   : > { %929 = vrot.lane.b32.xlu1 %v913_v3, %s1117_s9  ;;  %924 = vrot.lane.b32.xlu0 %v913_v3, %s1116_s7 }
 0x170   : > { %919 = vrot.lane.b32.xlu2 %v913_v3, %s1115_s20  ;;  %s795_s20 = sshll.u32 %s660_s17, 2 }
 0x171   : > { %s662_s24 = scalar_lea.hbm %s1615_s25, %s795_s20 }
 0x172   : > { %s666_s14 = sshll.u32 %s662_s24, 4  ;;  %s667_s14 = int_to_ptr.hbm [resolvable:$true] %s666_s14 }
 0x173   : > { %s1018_s8 = sshra.s32 %s667_s14, 4  ;;  %s1019_s8 = int_to_ptr.hbm [resolvable:$true] %s1018_s8 }
 0x174   : > { %s1020_s1 = scalar_lea.hbm %s1019_s8, 8 }
 0x175   : > { %p1021_p1 = scmp.ne.s32.totalorder %s1019_s8, %s1020_s1 }
 0x177   : > { %592 = vperm.xlu1 %902, %v589_v18   ;;  %939 = vrot.lane.b32.xlu0 %v913_v3, %s1119_s12  ;;  %s664_s12 = sshll.u32 %s1281_s10, 4  ;;  %p1022_p7 = pnand %p1021_p1, %p1242_p0  ;;  %s665_s12 = int_to_ptr.vmem [resolvable:$true] %s664_s12 }
 0x178   : > { %934 = vrot.lane.b32.xlu2 %v913_v3, %s1118_s11  ;;  %s1616_s11 = smov %s1615_s25 }
 0x179   : > { %p1023_p8 = pneg %p1022_p7  ;;  %s1024_s6 = scalar_lea.hbm %s1616_s11, 64 }
 0x17a   : > { %p1025_p10 = scmp.lt.s32.totalorder %s1019_s8, %s1616_s11  ;;  %p1026_p11 = scmp.lt.s32.totalorder %s1024_s6, %s1020_s1 }
 0x17c   : > { %p1027_p12 = por %p1026_p11, %p1025_p10 }
 0x17e   : > { %p1028_p13 = pnand %p1027_p12, %p1023_p8 }
 0x1c2   : > { %v905_v19 = vpop.permute.xlu2 %904 }
 0x1c3   : > { %v907_v22 = vunpack.i.h.bf16 %v905_v19  ;;  %v906_v25 = vunpack.i.l.bf16 %v905_v19 }
 0x1c5   : > { %v574_v29 = vsel %vm432_vm2, %v906_v25, %v907_v22  ;;  %v575_v30 = vsel %vm432_vm2, %v907_v22, %v906_v25 }
 0x1c6   : > { %v576_v31 = vmul.f32 %v574_v29, %v436_v12  ;;  %v577_v32 = vmul.f32 %v575_v30, %v437_v13 }
 0x1c8   : > { %v586_v33 = vpack.c.bf16 %v576_v31, %v576_v31  ;;  %v587_v34 = vpack.c.bf16 %v577_v32, %v577_v32 }
 0x1ca   : > { %v599_v35 = vsel %vm463_vm3, %v586_v33, 0  ;;  %v602_v36 = vsel %vm463_vm3, %v587_v34, 0  ;;  %v920_v37 = vpop.permute.xlu2 %919 }
 0x1cb   : > { %607 = vmatpush.bf16.msra.mxu2 %v599_v35  ;;  %620 = vmatpush.bf16.msra.mxu3 %v602_v36  ;;  %v922_v40 = vunpack.i.h.bf16 %v920_v37  ;;  %v921_v41 = vunpack.i.l.bf16 %v920_v37 }
 0x1cd   : > { %v550_v9 = vsel %vm390_vm4, %v921_v41, %v922_v40  ;;  %v551_v13 = vsel %vm390_vm4, %v922_v40, %v921_v41 }
 0x1ce   : > { %v552_v4 = vmul.f32 %v550_v9, %v394_v38  ;;  %v553_v5 = vmul.f32 %v551_v13, %v395_v39 }
 0x1d0   : > { %v787_v19 = vpack.c.bf16 %v553_v5, %v1123_v10 }
 0x1d9   : > { %v915_v42 = vpop.permute.xlu1 %914  ;;  %v910_v43 = vpop.permute.xlu0 %909 }
 0x1da   : > { %v917_v44 = vunpack.i.h.bf16 %v915_v42  ;;  %v916_v45 = vunpack.i.l.bf16 %v915_v42  ;;  %v912_v46 = vunpack.i.h.bf16 %v910_v43  ;;  %v911_v12 = vunpack.i.l.bf16 %v910_v43 }
 0x1dc   : > { %v558_v47 = vsel %vm404_vm1, %v911_v12, %v912_v46  ;;  %v566_v48 = vsel %vm418_vm0, %v916_v45, %v917_v44  ;;  %v559_v50 = vsel %vm404_vm1, %v912_v46, %v911_v12  ;;  %v567_v52 = vsel %vm418_vm0, %v917_v44, %v916_v45 }
 0x1dd   : > { %v560_v53 = vmul.f32 %v558_v47, %v408_v16  ;;  %v568_v61 = vmul.f32 %v566_v48, %v422_v14  ;;  %v561_v62 = vmul.f32 %v559_v50, %v409_v17  ;;  %v569_v63 = vmul.f32 %v567_v52, %v423_v15  ;;  %v935_v17 = vpop.permute.xlu2 %934 }
 0x1de   : > { %v783_v15 = vpack.c.bf16 %v552_v4, %v1123_v10  ;;  %v937_v29 = vunpack.i.h.bf16 %v935_v17  ;;  %v936_v30 = vunpack.i.l.bf16 %v935_v17 }
 0x1df   : > { %v584_v0 = vpack.c.bf16 %v568_v61, %v560_v53  ;;  %v585_v3 = vpack.c.bf16 %v569_v63, %v561_v62 }
 0x1e0   : > { %v518_v51 = vsel %vm334_vm7, %v936_v30, %v937_v29 }
 0x1e1   : > { %v930_v6 = vpop.permute.xlu1 %929  ;;  %v925_v8 = vpop.permute.xlu0 %924  ;;  %608 = vmatpush.bf16.msra.mxu2 %v584_v0  ;;  %621 = vmatpush.bf16.msra.mxu3 %v585_v3  ;;  %v521_v37 = vmul.f32 %v518_v51, %v339_v24 }
 0x1e2   : > { %v932_v16 = vunpack.i.h.bf16 %v930_v6  ;;  %v931_v14 = vunpack.i.l.bf16 %v930_v6  ;;  %v927_v18 = vunpack.i.h.bf16 %v925_v8  ;;  %v926_v11 = vunpack.i.l.bf16 %v925_v8 }
 0x1e4   : > { %v535_v28 = vsel %vm362_vm6, %v927_v18, %v926_v11  ;;  %v543_v38 = vsel %vm376_vm5, %v932_v16, %v931_v14  ;;  %v534_v39 = vsel %vm362_vm6, %v926_v11, %v927_v18  ;;  %v542_v22 = vsel %vm376_vm5, %v931_v14, %v932_v16 }
 0x1e5   : > { %784 = vmatpush.bf16.msk.msra.mxu2 %vm782_vm13, %v783_v15  ;;  %788 = vmatpush.bf16.msk.msra.mxu3 %vm786_vm14, %v787_v19  ;;  %v536_v55 = vmul.f32 %v535_v28, %v366_v57  ;;  %v544_v59 = vmul.f32 %v543_v38, %v380_v54  ;;  %v537_v25 = vmul.f32 %v534_v39, %v367_v58 }
 0x1e6   : > { %v545_v31 = vmul.f32 %v542_v22, %v381_v56  ;;  %v519_v57 = vsel %vm334_vm7, %v937_v29, %v936_v30 }
 0x1e7   : > { %v580_v32 = vpack.c.bf16 %v544_v59, %v536_v55  ;;  %v520_v56 = vmul.f32 %v519_v57, %v338_v23  ;;  %v511_v23 = vld [vmem:[#allocation3] sm:$0xff] }
 0x1e8   : > { %v581_v33 = vpack.c.bf16 %v545_v31, %v537_v25  ;;  %v513_v44 = vmul.f32 0.5, %v511_v23 }
 0x1e9   : > { %v940_v34 = vpop.permute.xlu0 %939  ;;  %610 = vmatpush.bf16.msra.mxu2 %v580_v32  ;;  %v593_v21 = vpop.permute.xlu1 %592 }
 0x1ea   : > { %v942_v35 = vunpack.i.h.bf16 %v940_v34  ;;  %v941_v36 = vunpack.i.l.bf16 %v940_v34  ;;  %623 = vmatpush.bf16.msra.mxu3 %v581_v33 }
 0x1ec   : > { %v527_v54 = vsel %vm348_vm8, %v942_v35, %v941_v36  ;;  %v526_v49 = vsel %vm348_vm8, %v941_v36, %v942_v35 }
 0x1ed   : > { %v528_v58 = vmul.f32 %v527_v54, %v352_v26  ;;  %v529_v40 = vmul.f32 %v526_v49, %v353_v27  ;;  %v512_v27 = vmul.f32 0.5, %v510_v20 }
 0x1ef   : > { %v578_v41 = vpack.c.bf16 %v528_v58, %v520_v56  ;;  %v579_v42 = vpack.c.bf16 %v529_v40, %v521_v37 }
 0x1f1   : > { %611 = vmatpush.bf16.msra.mxu2 %v578_v41  ;;  %624 = vmatpush.bf16.msra.mxu3 %v579_v42 }
 0x1f4   : > { %785 = vmatmul.msk.bf16.vlgmr.msra.gmra.mxu2 %vm459_vm9, %v588_v7  ;;  %789 = vmatmul.msk.bf16.vlgmr.msra.gmra.mxu3 %vm459_vm9, %v588_v7 }
 0x277   : > { %v613_v24 = vpop.f32.mrf.mxu2  ;;  %v626_v26 = vpop.f32.mrf.mxu3 }
 0x278   : > { %v614_v43 = vadd.f32 %v613_v24, %v593_v21  ;;  %v627_v45 = vadd.f32 %v626_v26, %v593_v21 }
 0x27a   : > { %v630_v46 = vadd.f32 %v614_v43, %v1284_v1  ;;  %v631_v12 = vadd.f32 %v627_v45, %v1292_v2 }
 0x27c   : > { %v632_v9 = vadd.f32 %v630_v46, %v512_v27  ;;  %v633_v13 = vadd.f32 %v631_v12, %v513_v44 }
 0x27e   : > { %vm634_vm15 = vcmp.ge.f32.partialorder %v632_v9, 1.0  ;;  %vm635_vm0 = vcmp.ge.f32.partialorder %v633_v13, 1.0 }
 0x27f   : > { %v615_v47 = vpop.f32.mrf.mxu2  ;;  %v628_v48 = vpop.f32.mrf.mxu3  ;;  %v790_v50 = vsel %vm634_vm15, 1.0, %v1121_v60  ;;  %v791_v1 = vsel %vm635_vm0, 1.0, %v1121_v60 }
 0x280   : > { %v640_v2 = vsub.f32 1.0, %v790_v50  ;;  %v641_v52 = vsub.f32 1.0, %v791_v1  ;;  %v646_v53 = vpack.c.bf16 %v791_v1, %v790_v50 }
 0x282   : > { %v642_v61 = vmul.f32 %v640_v2, %v632_v9  ;;  %v643_v62 = vmul.f32 %v641_v52, %v633_v13  ;;  %647 = vst [vmem:[%s1281_s10] sm:$0xff] %v646_v53 }
 0x283   : > { %1031 = shalt.err (!%p1028_p13)
}
 0x284   : > { %804 = dma.vmem_to_hbm [thread:$0]  (%p1242_p0), %s665_s12, 128, %s667_s14, %s649_s19   ;;  %644 = vst [vmem:[#allocation3 + $0x8] sm:$0xff] %v642_v61 }
 0x285   : > { %645 = vst [vmem:[#allocation3] sm:$0xff] %v643_v62 }
 0x286 PF: > { %s1618_s18 = sld [smem:[#allocation13_spill]]  ;;  %p821_p4 = scmp.ge.s32.totalorder %s1106_s28, 2 }
 0x288   : > { %p815_p5 = pnand %p821_p4, %p1248_p2 }
 0x28a   : > { %p816_p6 = pneg %p815_p5 }
 0x28c   : > { %s678_s17 = sand.u32 1, %s1618_s18  }
 0x28d   : > { %s679_s20 = scalar_lea.sflag [#allocation6], %s678_s17 }
 0x28e   : > { %1073 = dma.done.wait (%p816_p6), %s679_s20, 128  }
 0x28f   : > { %1075 = vsyncadd (%p816_p6), %s679_s20, 4294967168  ;;  %s23_s28 = sadd.s32 1, %s1106_s28   ;;  %s1620_s7 = sld [smem:[#allocation14_spill]] }
 0x290   : > { %p20_p9 = scmp.ge.s32.totalorder %s23_s28, 10   ;;  %s1621_s9 = sld [smem:[#allocation15_spill]] }
 0x291   : > { %s1622_s21 = smov %s1082_s22  ;;  %s1623_s22 = smov %s1086_s23 }
 0x292   : > { %s1624_s23 = smov %s1258_s13  ;;  %s1625_s24 = smov %s1098_s26 }
 0x293   : > { %s1626_s25 = smov %s1102_s27  ;;  %22 = sbr.rel (!%p20_p9) target bundleno = 11 (0xb), region = 97 }
 0x295   : > { %s1627_s26 = smov %s1620_s7 }
 0x296   : > { %s1628_s27 = smov %s1621_s9 }
 0x298   :  { %685 = vsyncpa [#allocation5], 1 }
 0x299   :  { %687 = vsyncpa [#allocation5 + $0x1], 1 }
 0x29a   :  { %688 = vsyncpa [#allocation8], 1 }
 0x29b   :  { %689 = vsyncpa [#allocation6], 1 }
 0x29c   :  { %691 = vsyncpa [#allocation6 + $0x1], 1 }

</bundles_post_ra>
